<compile_context>
chip_gen: v6e
topology: v6e:2x2x1
jax: 0.10.0
libtpu: 0.0.40
codegen_flags: <defaults>
</compile_context>

<pallas_src>
import functools

import numpy as np
import jax
import jax.numpy as jnp
from jax.experimental import pallas as pl
from jax.experimental.pallas import tpu as pltpu


def _round_up(v, m):
    return (v + m - 1) // m * m


# ---------------------------------------------------------------------------
# Pallas kernel: one batch block (nb whole images) per grid step.
#   x_ref    : (nb, Cin_p, Mi)       bf16  zero-padded, row-flattened images
#   w_ref    : (Cout_p, k*k*Cin_p)   bf16  taps flattened along contraction
#   b_ref    : (Cout_p, 1)           f32   folded conv+BN bias
#   out_ref  : (nb, Cout_p, Mo)      bf16  flattened outputs (Wp-strided rows)
#   xcat_ref : (k*k*Cin_p, nb*Mo)    bf16  VMEM scratch (stacked tap slabs)
# ---------------------------------------------------------------------------
def _conv_bn_relu_kernel(x_ref, w_ref, b_ref, out_ref, xcat_ref, *,
                         k, wp, mo, cin_p, cout_p, nb, lane_chunk,
                         single_matmul):
    f32 = jnp.float32
    bias = b_ref[...]                                    # hoisted (Cout_p, 1)

    if single_matmul:
        # Pay the lane realignment once per tap into the scratch, then one
        # deep matmul per (image, lane-chunk).
        for b in range(nb):
            for dy in range(k):
                for dx in range(k):
                    t = dy * k + dx
                    o = dy * wp + dx                     # static tap offset
                    xcat_ref[t * cin_p:(t + 1) * cin_p,
                             b * mo:(b + 1) * mo] = x_ref[b, :, o:o + mo]
        for b in range(nb):
            for c0 in range(0, mo, lane_chunk):
                c1 = min(c0 + lane_chunk, mo)
                seg = jnp.dot(w_ref[...],
                              xcat_ref[:, b * mo + c0:b * mo + c1],
                              preferred_element_type=f32)
                out_ref[b, :, c0:c1] = jnp.maximum(seg + bias,
                                                   0.0).astype(out_ref.dtype)
    else:
        # v7x alternative: per-tap accumulating-dot chain (MRB accumulates in
        # place).  Same flat weight; tap t is the lane slice [t*Cin_p, ...).
        for b in range(nb):
            for c0 in range(0, mo, lane_chunk):
                c1 = min(c0 + lane_chunk, mo)
                acc = jnp.zeros((cout_p, c1 - c0), f32)
                for dy in range(k):
                    for dx in range(k):
                        t = dy * k + dx
                        o = dy * wp + dx
                        acc = acc + jnp.dot(
                            w_ref[:, t * cin_p:(t + 1) * cin_p],
                            x_ref[b, :, o + c0:o + c1],
                            preferred_element_type=f32)
                out_ref[b, :, c0:c1] = jnp.maximum(acc + bias,
                                                   0.0).astype(out_ref.dtype)


# ---------------------------------------------------------------------------
# Wrapper: BN folding + minimal layout plumbing.
# ---------------------------------------------------------------------------
def single_conv_block_forward(x, weight, bias, gamma, beta, running_mean,
                              running_var, *, stride=1, padding=0, eps=1e-5,
                              batch_block=1, lane_chunk=2048,
                              single_matmul=True,
                              compute_dtype=jnp.bfloat16,
                              out_dtype=jnp.float32):
    """x: (N, Cin, H, W) NCHW.  Returns (N, Cout, Ho, Wo) in out_dtype.

    Note: inputs/weights are computed in bf16 (f32 accumulation); the kernel
    writes bf16 and the wrapper casts to out_dtype inside the crop fusion.
    """
    n, cin, h, w = x.shape
    cout, cin_w, k, k_w = weight.shape
    assert cin_w == cin and k_w == k
    if stride != 1:
        # TODO(synk): stride > 1 not supported by the contiguous tap-slab trick.
        raise NotImplementedError("stride > 1 not supported by this kernel")
    p = padding
    hp, wp = h + 2 * p, w + 2 * p
    ho, wo = hp - k + 1, wp - k + 1
    assert ho >= 1 and wo >= 1

    # ---- fold eval-mode BatchNorm into the conv -----------------------------
    scale = gamma / jnp.sqrt(running_var + eps)                   # (Cout,)
    w_eff = weight * scale[:, None, None, None]
    b_eff = beta + (bias - running_mean) * scale

    # ---- sizes / alignment ---------------------------------------------------
    cin_p = _round_up(cin, 16)        # bf16 sublane-packing minimum
    cout_p = _round_up(cout, 16)
    kk = k * k
    nb = max(1, min(batch_block, n))
    g = -(-n // nb)                                               # grid steps
    o_max = (k - 1) * (wp + 1)        # largest tap offset
    mo = _round_up(ho * wp, 128)      # lane-dense output columns per image
    mi = _round_up(mo + o_max, 128)   # input columns per image (covers taps)
    lane_chunk = max(128, _round_up(min(lane_chunk, mo), 128))

    # ---- flattened weights: column index = (dy*k+dx)*Cin_p + ci --------------
    w_flat = jnp.transpose(w_eff, (0, 2, 3, 1))                   # (Cout,k,k,Cin)
    w_flat = jnp.pad(w_flat, ((0, cout_p - cout), (0, 0), (0, 0),
                              (0, cin_p - cin)))
    w_flat = w_flat.reshape(cout_p, kk * cin_p).astype(compute_dtype)
    b_col = jnp.pad(b_eff, (0, cout_p - cout)).reshape(cout_p, 1)
    b_col = b_col.astype(jnp.float32)

    # ---- input prep: cast + one pad + free reshape + one lane-tail pad -------
    xq = x.astype(compute_dtype)
    xq = jnp.pad(xq, ((0, g * nb - n), (0, cin_p - cin), (p, p), (p, p)))
    xf = xq.reshape(g * nb, cin_p, hp * wp)
    xf = jnp.pad(xf, ((0, 0), (0, 0), (0, mi - hp * wp)))

    kernel = functools.partial(
        _conv_bn_relu_kernel, k=k, wp=wp, mo=mo, cin_p=cin_p, cout_p=cout_p,
        nb=nb, lane_chunk=lane_chunk, single_matmul=single_matmul)

    grid_spec = pltpu.PrefetchScalarGridSpec(
        num_scalar_prefetch=0,
        grid=(g,),
        in_specs=[
            pl.BlockSpec((nb, cin_p, mi), lambda i: (i, 0, 0)),
            # Grid-invariant operands (tiny); double-buffering them is ~free.
            pl.BlockSpec((cout_p, kk * cin_p), lambda i: (0, 0)),
            pl.BlockSpec((cout_p, 1), lambda i: (0, 0)),
        ],
        out_specs=pl.BlockSpec((nb, cout_p, mo), lambda i: (i, 0, 0)),
        scratch_shapes=[pltpu.VMEM((kk * cin_p, nb * mo), compute_dtype)],
    )

    # Double-buffered X/out blocks + scratch + invariants; cap at 48 MiB so a
    # v5e/v6e-sized batch_block cannot blow v7x's 64 MiB VMEM.
    step_bytes = (2 * nb * cin_p * mi * 2 + 2 * nb * cout_p * mo * 2
                  + kk * cin_p * nb * mo * 2
                  + 2 * cout_p * kk * cin_p * 2 + 2 * cout_p * 4)
    vmem_limit = int(min(max(2 * step_bytes + (4 << 20), 16 << 20), 48 << 20))

    cost = pl.CostEstimate(
        flops=int(2 * n * cout * ho * wo * cin * kk),
        transcendentals=0,
        bytes_accessed=int(xf.size * 2 + w_flat.size * 2 + b_col.size * 4
                           + g * nb * cout_p * mo * 2))

    out_p = pl.pallas_call(
        kernel,
        out_shape=jax.ShapeDtypeStruct((g * nb, cout_p, mo), compute_dtype),
        grid_spec=grid_spec,
        compiler_params=pltpu.CompilerParams(
            dimension_semantics=("parallel",),
            vmem_limit_bytes=vmem_limit),
        cost_estimate=cost,
    )(xf, w_flat, b_col)

    # ---- single crop fusion: batch/channel/row crop + NCHW reshape + cast ----
    out = out_p[:n, :cout, :ho * wp].reshape(n, cout, ho, wp)[:, :, :, :wo]
    return out.astype(out_dtype)


# ---------------------------------------------------------------------------
# Pure-JAX reference (lax conv + eval-mode BN + ReLU), f32 HIGHEST precision.
# ---------------------------------------------------------------------------
def single_conv_block_reference(x, weight, bias, gamma, beta, running_mean,
                                running_var, *, stride=1, padding=0, eps=1e-5):
    y = jax.lax.conv_general_dilated(
        x, weight, window_strides=(stride, stride),
        padding=((padding, padding), (padding, padding)),
        dimension_numbers=("NCHW", "OIHW", "NCHW"),
        precision=jax.lax.Precision.HIGHEST)
    y = y + bias[None, :, None, None]
    inv = jax.lax.rsqrt(running_var + eps)
    y = ((y - running_mean[None, :, None, None])
         * (gamma * inv)[None, :, None, None] + beta[None, :, None, None])
    return jnp.maximum(y, 0.0)


# ---------------------------------------------------------------------------
if __name__ == "__main__":
    key = jax.random.PRNGKey(0)
    kx, kw, kb, kg, kbeta, km, kv = jax.random.split(key, 7)

    n, cin, h, w = 4, 4, 16, 16
    cout, k, s, p = 8, 3, 1, 1

    x = jax.random.normal(kx, (n, cin, h, w), jnp.float32)
    weight = jax.random.normal(kw, (cout, cin, k, k), jnp.float32) / np.sqrt(cin * k * k)
    bias = 0.1 * jax.random.normal(kb, (cout,), jnp.float32)
    gamma = 1.0 + 0.1 * jax.random.normal(kg, (cout,), jnp.float32)
    beta = 0.1 * jax.random.normal(kbeta, (cout,), jnp.float32)
    running_mean = 0.1 * jax.random.normal(km, (cout,), jnp.float32)
    running_var = 0.5 + jnp.abs(jax.random.normal(kv, (cout,), jnp.float32))

    fwd = jax.jit(functools.partial(single_conv_block_forward,
                                    stride=s, padding=p, batch_block=1))
    y = jax.block_until_ready(
        fwd(x, weight, bias, gamma, beta, running_mean, running_var))
    assert y.shape == (n, cout, h, w), y.shape

    y_ref = jax.block_until_ready(
        single_conv_block_reference(x, weight, bias, gamma, beta, running_mean,
                                    running_var, stride=s, padding=p))
    # bf16 compute vs f32 HIGHEST reference -> loose tolerance (inference-grade).
    if not np.allclose(np.asarray(y, np.float32), np.asarray(y_ref, np.float32),
                       rtol=3e-2, atol=3e-2):
        max_err = float(np.max(np.abs(np.asarray(y, np.float32)
                                      - np.asarray(y_ref, np.float32))))
        raise AssertionError(f"mismatch vs reference, max abs err = {max_err}")

    print("KERNEL_OK")
</pallas_src>

<mosaic_0001>
module attributes {stable_mosaic.version = 11 : i64} {
  func.func @_conv_bn_relu_kernel(%arg0: i32, %arg1: memref<1x16x512xbf16, #tpu.memory_space<vmem>>, %arg2: memref<16x144xbf16, #tpu.memory_space<vmem>>, %arg3: memref<16x1xf32, #tpu.memory_space<vmem>>, %arg4: memref<1x16x384xbf16, #tpu.memory_space<vmem>>, %arg5: memref<144x384xbf16, #tpu.memory_space<vmem>>) attributes {dimension_semantics = [#tpu.dimension_semantics<parallel>], iteration_bounds = array<i64: 4>, scalar_prefetch = 0 : i64, scratch_operands = 1 : i64, tpu.core_type = #tpu.core_type<tc>, window_params = [{transform_indices = @transform_0, window_bounds = array<i64: 1, 16, 512>}, {pipeline_mode = #tpu.pipeline_mode<synchronous>, transform_indices = @transform_1, window_bounds = array<i64: 16, 144>}, {pipeline_mode = #tpu.pipeline_mode<synchronous>, transform_indices = @transform_2, window_bounds = array<i64: 16, 1>}, {transform_indices = @transform_3, window_bounds = array<i64: 1, 16, 384>}]} {
    %c0 = arith.constant 0 : index
    %c0_0 = arith.constant 0 : index
    %0 = vector.load %arg3[%c0, %c0_0] : memref<16x1xf32, #tpu.memory_space<vmem>>, vector<16x1xf32>
    %c0_1 = arith.constant 0 : index
    %c0_2 = arith.constant 0 : index
    %c0_3 = arith.constant 0 : index
    %1 = vector.load %arg1[%c0_1, %c0_2, %c0_3] : memref<1x16x512xbf16, #tpu.memory_space<vmem>>, vector<1x16x384xbf16>
    %2 = vector.shape_cast %1 : vector<1x16x384xbf16> to vector<16x384xbf16>
    %c0_4 = arith.constant 0 : index
    %c0_5 = arith.constant 0 : index
    %3 = vector.load %arg5[%c0_4, %c0_5] : memref<144x384xbf16, #tpu.memory_space<vmem>>, vector<16x384xbf16>
    tpu.vector_store %arg5[%c0_4, %c0_5], %2 {strides = array<i32>} : memref<144x384xbf16, #tpu.memory_space<vmem>>, vector<16x384xbf16>,
    %c0_6 = arith.constant 0 : index
    %c0_7 = arith.constant 0 : index
    %c1 = arith.constant 1 : index
    %4 = vector.load %arg1[%c0_6, %c0_7, %c1] : memref<1x16x512xbf16, #tpu.memory_space<vmem>>, vector<1x16x384xbf16>
    %5 = vector.shape_cast %4 : vector<1x16x384xbf16> to vector<16x384xbf16>
    %c16 = arith.constant 16 : index
    %c0_8 = arith.constant 0 : index
    %6 = vector.load %arg5[%c16, %c0_8] : memref<144x384xbf16, #tpu.memory_space<vmem>>, vector<16x384xbf16>
    tpu.vector_store %arg5[%c16, %c0_8], %5 {strides = array<i32>} : memref<144x384xbf16, #tpu.memory_space<vmem>>, vector<16x384xbf16>,
    %c0_9 = arith.constant 0 : index
    %c0_10 = arith.constant 0 : index
    %c2 = arith.constant 2 : index
    %7 = vector.load %arg1[%c0_9, %c0_10, %c2] : memref<1x16x512xbf16, #tpu.memory_space<vmem>>, vector<1x16x384xbf16>
    %8 = vector.shape_cast %7 : vector<1x16x384xbf16> to vector<16x384xbf16>
    %c32 = arith.constant 32 : index
    %c0_11 = arith.constant 0 : index
    %9 = vector.load %arg5[%c32, %c0_11] : memref<144x384xbf16, #tpu.memory_space<vmem>>, vector<16x384xbf16>
    tpu.vector_store %arg5[%c32, %c0_11], %8 {strides = array<i32>} : memref<144x384xbf16, #tpu.memory_space<vmem>>, vector<16x384xbf16>,
    %c0_12 = arith.constant 0 : index
    %c0_13 = arith.constant 0 : index
    %c18 = arith.constant 18 : index
    %10 = vector.load %arg1[%c0_12, %c0_13, %c18] : memref<1x16x512xbf16, #tpu.memory_space<vmem>>, vector<1x16x384xbf16>
    %11 = vector.shape_cast %10 : vector<1x16x384xbf16> to vector<16x384xbf16>
    %c48 = arith.constant 48 : index
    %c0_14 = arith.constant 0 : index
    %12 = vector.load %arg5[%c48, %c0_14] : memref<144x384xbf16, #tpu.memory_space<vmem>>, vector<16x384xbf16>
    tpu.vector_store %arg5[%c48, %c0_14], %11 {strides = array<i32>} : memref<144x384xbf16, #tpu.memory_space<vmem>>, vector<16x384xbf16>,
    %c0_15 = arith.constant 0 : index
    %c0_16 = arith.constant 0 : index
    %c19 = arith.constant 19 : index
    %13 = vector.load %arg1[%c0_15, %c0_16, %c19] : memref<1x16x512xbf16, #tpu.memory_space<vmem>>, vector<1x16x384xbf16>
    %14 = vector.shape_cast %13 : vector<1x16x384xbf16> to vector<16x384xbf16>
    %c64 = arith.constant 64 : index
    %c0_17 = arith.constant 0 : index
    %15 = vector.load %arg5[%c64, %c0_17] : memref<144x384xbf16, #tpu.memory_space<vmem>>, vector<16x384xbf16>
    tpu.vector_store %arg5[%c64, %c0_17], %14 {strides = array<i32>} : memref<144x384xbf16, #tpu.memory_space<vmem>>, vector<16x384xbf16>,
    %c0_18 = arith.constant 0 : index
    %c0_19 = arith.constant 0 : index
    %c20 = arith.constant 20 : index
    %16 = vector.load %arg1[%c0_18, %c0_19, %c20] : memref<1x16x512xbf16, #tpu.memory_space<vmem>>, vector<1x16x384xbf16>
    %17 = vector.shape_cast %16 : vector<1x16x384xbf16> to vector<16x384xbf16>
    %c80 = arith.constant 80 : index
    %c0_20 = arith.constant 0 : index
    %18 = vector.load %arg5[%c80, %c0_20] : memref<144x384xbf16, #tpu.memory_space<vmem>>, vector<16x384xbf16>
    tpu.vector_store %arg5[%c80, %c0_20], %17 {strides = array<i32>} : memref<144x384xbf16, #tpu.memory_space<vmem>>, vector<16x384xbf16>,
    %c0_21 = arith.constant 0 : index
    %c0_22 = arith.constant 0 : index
    %c36 = arith.constant 36 : index
    %19 = vector.load %arg1[%c0_21, %c0_22, %c36] : memref<1x16x512xbf16, #tpu.memory_space<vmem>>, vector<1x16x384xbf16>
    %20 = vector.shape_cast %19 : vector<1x16x384xbf16> to vector<16x384xbf16>
    %c96 = arith.constant 96 : index
    %c0_23 = arith.constant 0 : index
    %21 = vector.load %arg5[%c96, %c0_23] : memref<144x384xbf16, #tpu.memory_space<vmem>>, vector<16x384xbf16>
    tpu.vector_store %arg5[%c96, %c0_23], %20 {strides = array<i32>} : memref<144x384xbf16, #tpu.memory_space<vmem>>, vector<16x384xbf16>,
    %c0_24 = arith.constant 0 : index
    %c0_25 = arith.constant 0 : index
    %c37 = arith.constant 37 : index
    %22 = vector.load %arg1[%c0_24, %c0_25, %c37] : memref<1x16x512xbf16, #tpu.memory_space<vmem>>, vector<1x16x384xbf16>
    %23 = vector.shape_cast %22 : vector<1x16x384xbf16> to vector<16x384xbf16>
    %c112 = arith.constant 112 : index
    %c0_26 = arith.constant 0 : index
    %24 = vector.load %arg5[%c112, %c0_26] : memref<144x384xbf16, #tpu.memory_space<vmem>>, vector<16x384xbf16>
    tpu.vector_store %arg5[%c112, %c0_26], %23 {strides = array<i32>} : memref<144x384xbf16, #tpu.memory_space<vmem>>, vector<16x384xbf16>,
    %c0_27 = arith.constant 0 : index
    %c0_28 = arith.constant 0 : index
    %c38 = arith.constant 38 : index
    %25 = vector.load %arg1[%c0_27, %c0_28, %c38] : memref<1x16x512xbf16, #tpu.memory_space<vmem>>, vector<1x16x384xbf16>
    %26 = vector.shape_cast %25 : vector<1x16x384xbf16> to vector<16x384xbf16>
    %c128 = arith.constant 128 : index
    %c0_29 = arith.constant 0 : index
    %27 = vector.load %arg5[%c128, %c0_29] : memref<144x384xbf16, #tpu.memory_space<vmem>>, vector<16x384xbf16>
    tpu.vector_store %arg5[%c128, %c0_29], %26 {strides = array<i32>} : memref<144x384xbf16, #tpu.memory_space<vmem>>, vector<16x384xbf16>,
    %c0_30 = arith.constant 0 : index
    %c0_31 = arith.constant 0 : index
    %28 = vector.load %arg2[%c0_30, %c0_31] : memref<16x144xbf16, #tpu.memory_space<vmem>>, vector<16x144xbf16>
    %c0_32 = arith.constant 0 : index
    %c0_33 = arith.constant 0 : index
    %29 = vector.load %arg5[%c0_32, %c0_33] : memref<144x384xbf16, #tpu.memory_space<vmem>>, vector<144x384xbf16>
    %cst = arith.constant dense<0.000000e+00> : vector<16x384xf32>
    %30 = tpu.matmul %28, %29, %cst {dimension_numbers = #tpu.dot_dimension_numbers<[1], [0], [0], [1], [0, 0, 1, 1], [], []>} : vector<16x144xbf16>, vector<144x384xbf16>, vector<16x384xf32> -> vector<16x384xf32>
    %31 = vector.broadcast %0 : vector<16x1xf32> to vector<16x384xf32>
    %32 = arith.addf %30, %31 : vector<16x384xf32>
    %cst_34 = arith.constant 0.000000e+00 : f32
    %33 = vector.broadcast %cst_34 : f32 to vector<16x384xf32>
    %34 = arith.maximumf %32, %33 : vector<16x384xf32>
    %35 = arith.truncf %34 : vector<16x384xf32> to vector<16x384xbf16>
    %c0_35 = arith.constant 0 : index
    %c0_36 = arith.constant 0 : index
    %c0_37 = arith.constant 0 : index
    %36 = vector.load %arg4[%c0_35, %c0_36, %c0_37] : memref<1x16x384xbf16, #tpu.memory_space<vmem>>, vector<1x16x384xbf16>
    %37 = vector.shape_cast %36 : vector<1x16x384xbf16> to vector<16x384xbf16>
    %38 = vector.shape_cast %35 : vector<16x384xbf16> to vector<1x16x384xbf16>
    tpu.vector_store %arg4[%c0_35, %c0_36, %c0_37], %38 {strides = array<i32>} : memref<1x16x384xbf16, #tpu.memory_space<vmem>>, vector<1x16x384xbf16>,
    return
  }
  func.func @transform_0(%arg0: i32) -> (i32, i32, i32) {
    %c0_i32 = arith.constant 0 : i32
    %c0_i32_0 = arith.constant 0 : i32
    %c0_i32_1 = arith.constant 0 : i32
    return %arg0, %c0_i32, %c0_i32_0 : i32, i32, i32
  }
  func.func @transform_1(%arg0: i32) -> (i32, i32) {
    %c0_i32 = arith.constant 0 : i32
    %c0_i32_0 = arith.constant 0 : i32
    %c0_i32_1 = arith.constant 0 : i32
    return %c0_i32, %c0_i32_0 : i32, i32
  }
  func.func @transform_2(%arg0: i32) -> (i32, i32) {
    %c0_i32 = arith.constant 0 : i32
    %c0_i32_0 = arith.constant 0 : i32
    %c0_i32_1 = arith.constant 0 : i32
    return %c0_i32, %c0_i32_0 : i32, i32
  }
  func.func @transform_3(%arg0: i32) -> (i32, i32, i32) {
    %c0_i32 = arith.constant 0 : i32
    %c0_i32_0 = arith.constant 0 : i32
    %c0_i32_1 = arith.constant 0 : i32
    return %arg0, %c0_i32, %c0_i32_0 : i32, i32, i32
  }
}

</mosaic_0001>

<bundles_post_ra>
// kernel: single_conv_block_forward.1
= control target key start
LH: loop header
LB: loop body
LE: loop exit
PB: predicated region body
PF: predicated region fallthrough
CT: control target
= control target key end

     0   :  { %s958_s12 = smov 0   ;;  %s1084_s0 = inlined_call_operand.vmem [shape: bf16[4,16,512], index: 0, kind: input, shape index: {}]   ;;  %s1085_s1 = inlined_call_operand.vmem [shape: bf16[16,144], index: 1, kind: input, shape index: {}]   ;;  %s1086_s2 = inlined_call_operand.vmem [shape: f32[16,1], index: 2, kind: input, shape index: {}]   ;;  %s1087_s3 = inlined_call_operand.vmem [shape: bf16[4,16,384], index: 3, kind: output, shape index: {}]  }
   0x1 LB: > { %s837_s13 = sadd.s32 4294967295, %s927_s12   ;;  %p841_p0 = scmp.ge.s32.totalorder %s927_s12, 1  ;;  %s927_s12 = sphi %s958_s12, %s13_s12  }
   0x2   : > { %p137_p1 = scmp.lt.s32.totalorder %s927_s12, 5 }
   0x4   : > { %p138_p2 = pnand %p841_p0, %p137_p1 }
   0x5   : > { %p161_p3 = scmp.lt.s32.totalorder (!%p138_p2), %s837_s13, 3  ;;  %s929_s18 = smov (!%p138_p2), 91  }
   0x6   : > { %141 = sbr.rel (%p138_p2) target bundleno = 408 (0x198), region = 32  ;;  %s931_s19 = smov (!%p138_p2), 92  }
   0x7   : > { %s932_s20 = smov (!%p138_p2), 108   ;;  %s933_s21 = smov (!%p138_p2), 109  }
   0x8   : > { %s934_s22 = smov (!%p138_p2), 110   ;;  %s935_s23 = smov (!%p138_p2), 126  }
   0x9   : > { %s936_s24 = smov (!%p138_p2), 127   ;;  %s937_s27 = smov (!%p138_p2), 90  }
   0xb   : > { %s1089_s13 = smov (!%p161_p3, %s837_s13), 3  ;;  %v930_v4 = vmov 0   ;;  %v920_v9 = vld [vmem:[%s1085_s1 + $0x4] ss:$8 sps:$4 sm:$0xff]   ;;  %vm664_vm0 = vcmask 130048   ;;  %vm202_vm1 = vcmask 1043456  }
   0xc   : > { %s882_s14 = sshll.u32 %s1089_s13, 5  ;;  %711 = vmatprep.subr.bf16.mxu1 %v930_v4  ;;  %905 = vset.pattern.permute.xlu0 %v930_v4  ;;  %v172_v10 = vld [vmem:[%s1086_s2] sm:$0xff]  ;;  %v173_v11 = vld [vmem:[%s1086_s2 + $0x8] sm:$0xff]  ;;  %vm414_vm2 = vcmask 744448   ;;  %vm379_vm3 = vcmask 752640   ;;  %vm344_vm4 = vcmask 883712  }
   0xd   : > { %s972_s17 = scalar_lea.vmem %s1084_s0, %s882_s14  ;;  %906 = vset.pattern.permute.xlu1 %v930_v4  ;;  %875 = vmatprep.mubr.msk.bf16.mxu1 %vm664_vm0, %v920_v9  ;;  %vm309_vm5 = vcmask 891904   ;;  %vm274_vm6 = vcmask 900096   ;;  %vm239_vm7 = vcmask 1031168   ;;  %vm204_vm8 = vcmask 1039360   ;;  %s887_s7 = smul.u32 24, %s1089_s13 }
   0xe   : > { %v975_v0 = vld [vmem:[%s972_s17 + $0x10] sm:$0xff]  ;;  %v978_v1 = vld [vmem:[%s972_s17] sm:$0xff]  ;;  %v396_v2 = vld [vmem:[%s972_s17 + $0x18] sm:$0xff]  ;;  %874 = vmatprep.mubr.msk.bf16.mxu0 %vm664_vm0, %v920_v9  ;;  %vm449_vm9 = vcmask 736256  }
   0xf   : > { %405 = vrot.lane.b32.xlu1 %v975_v0, %s929_s18  ;;  %401 = vrot.lane.b32.xlu0 %v978_v1, %s929_s18  ;;  %v394_v3 = vld [vmem:[%s972_s17 + $0x8] sm:$0xff]  ;;  %v177_v6 = vld [vmem:[%s972_s17 + $0x18] sm:$0xf]  ;;  %v848_v7 = vcombine.high %v978_v1, %v975_v0  ;;  %v847_v8 = vcombine.low %v978_v1, %v975_v0  ;;  %s170_s10 = scalar_lea.vmem %s1087_s3, %s887_s7 }
  0x10   : > { %v175_v5 = vld [vmem:[%s972_s17 + $0x8] sm:$0xf]  ;;  %181 = vst [vmem:[#allocation2 + $0x14] sm:$0xf] %v177_v6 }
  0x11   : > { %179 = vst [vmem:[#allocation2 + $0x8] sm:$0xf] %v175_v5 }
  0x13   : > { %407 = vrot.lane.b32.xlu1 %v396_v2, %s929_s18  ;;  %403 = vrot.lane.b32.xlu0 %v394_v3, %s929_s18 }
  0x17   : > { %368 = vrot.lane.b32.xlu1 %v394_v3, %s931_s19  ;;  %366 = vrot.lane.b32.xlu0 %v978_v1, %s931_s19 }
  0x1b   : > { %372 = vrot.lane.b32.xlu1 %v396_v2, %s931_s19  ;;  %370 = vrot.lane.b32.xlu0 %v975_v0, %s931_s19 }
  0x1f   : > { %333 = vrot.lane.b32.xlu1 %v394_v3, %s932_s20  ;;  %331 = vrot.lane.b32.xlu0 %v978_v1, %s932_s20 }
  0x23   : > { %337 = vrot.lane.b32.xlu1 %v396_v2, %s932_s20  ;;  %335 = vrot.lane.b32.xlu0 %v975_v0, %s932_s20 }
  0x27   : > { %298 = vrot.lane.b32.xlu1 %v394_v3, %s933_s21  ;;  %296 = vrot.lane.b32.xlu0 %v978_v1, %s933_s21 }
  0x2b   : > { %302 = vrot.lane.b32.xlu1 %v396_v2, %s933_s21  ;;  %300 = vrot.lane.b32.xlu0 %v975_v0, %s933_s21 }
  0x2f   : > { %263 = vrot.lane.b32.xlu1 %v394_v3, %s934_s22  ;;  %261 = vrot.lane.b32.xlu0 %v978_v1, %s934_s22 }
  0x33   : > { %267 = vrot.lane.b32.xlu1 %v396_v2, %s934_s22  ;;  %265 = vrot.lane.b32.xlu0 %v975_v0, %s934_s22 }
  0x37   : > { %228 = vrot.lane.b32.xlu1 %v394_v3, %s935_s23  ;;  %226 = vrot.lane.b32.xlu0 %v978_v1, %s935_s23 }
  0x3b   : > { %232 = vrot.lane.b32.xlu1 %v396_v2, %s935_s23  ;;  %230 = vrot.lane.b32.xlu0 %v975_v0, %s935_s23 }
  0x3f   : > { %192 = vrot.lane.b32.xlu1 %v394_v3, %s936_s24  ;;  %190 = vrot.lane.b32.xlu0 %v978_v1, %s936_s24 }
  0x43   : > { %196 = vrot.lane.b32.xlu1 %v396_v2, %s936_s24  ;;  %194 = vrot.lane.b32.xlu0 %v975_v0, %s936_s24 }
  0x47   : > { %438 = vrot.lane.b32.xlu1 %v394_v3, %s937_s27  ;;  %436 = vrot.lane.b32.xlu0 %v978_v1, %s937_s27 }
  0x4b   : > { %442 = vrot.lane.b32.xlu1 %v396_v2, %s937_s27  ;;  %440 = vrot.lane.b32.xlu0 %v975_v0, %s937_s27 }
  0x4f   : > { %503 = vperm.xlu0 %905, %v172_v10   ;;  %508 = vperm.xlu1 %906, %v173_v11  }
  0x81   : > { %v406_v12 = vpop.permute.xlu1 %405  ;;  %v402_v13 = vpop.permute.xlu0 %401 }
  0x82   : > { %v409_v14 = vrot.slane %v402_v13, 4  ;;  %v411_v17 = vrot.slane %v406_v12, 4 }
  0x85   : > { %v408_v15 = vpop.permute.xlu1 %407  ;;  %v404_v16 = vpop.permute.xlu0 %403 }
  0x86   : > { %v412_v18 = vrot.slane %v408_v15, 4  ;;  %v410_v19 = vrot.slane %v404_v16, 4 }
  0x88   : > { %v417_v20 = vsel %vm202_vm1, %v411_v17, %v412_v18  ;;  %v419_v21 = vsel %vm414_vm2, %v408_v15, %v412_v18  ;;  %v413_v22 = vsel %vm202_vm1, %v409_v14, %v410_v19  ;;  %v416_v23 = vsel %vm414_vm2, %v404_v16, %v410_v19 }
  0x89   : > { %v418_v24 = vsel %vm414_vm2, %v406_v12, %v417_v20  ;;  %427 = vst [vmem:[#allocation2 + $0xbc] sm:$0xf] %v419_v21  ;;  %v415_v25 = vsel %vm414_vm2, %v402_v13, %v413_v22  ;;  %425 = vst [vmem:[#allocation2 + $0xb0] sm:$0xf] %v416_v23  ;;  %v369_v26 = vpop.permute.xlu1 %368  ;;  %v367_v27 = vpop.permute.xlu0 %366 }
  0x8a   : > { %v375_v28 = vrot.slane %v369_v26, 4  ;;  %v374_v29 = vrot.slane %v367_v27, 4  ;;  %v869_v30 = vcombine.high %v415_v25, %v418_v24  ;;  %v868_v31 = vcombine.low %v415_v25, %v418_v24 }
  0x8c   : > { %v381_v32 = vsel %vm379_vm3, %v369_v26, %v375_v28  ;;  %v378_v33 = vsel %vm202_vm1, %v374_v29, %v375_v28  ;;  %668 = vmatprep.subr.bf16.mxu0 %v869_v30 }
  0x8d   : > { %390 = vst [vmem:[#allocation2 + $0x98] sm:$0xf] %v381_v32  ;;  %v380_v34 = vsel %vm379_vm3, %v367_v27, %v378_v33  ;;  %v373_v35 = vpop.permute.xlu1 %372  ;;  %v371_v36 = vpop.permute.xlu0 %370  ;;  %669 = vmatpush1.bf16.msra.mxu0 %v868_v31 }
  0x8e   : > { %v377_v37 = vrot.slane %v373_v35, 4  ;;  %v376_v38 = vrot.slane %v371_v36, 4 }
  0x90   : > { %v384_v39 = vsel %vm379_vm3, %v373_v35, %v377_v37  ;;  %v382_v40 = vsel %vm202_vm1, %v376_v38, %v377_v37  ;;  %v907_v41 = vld [vmem:[#allocation2 + $0xb0] ss:$12 sps:$4 sm:$0xff]  }
  0x91   : > { %392 = vst [vmem:[#allocation2 + $0xa4] sm:$0xf] %v384_v39  ;;  %v383_v42 = vsel %vm379_vm3, %v371_v36, %v382_v40  ;;  %v334_v43 = vpop.permute.xlu1 %333  ;;  %v332_v44 = vpop.permute.xlu0 %331  ;;  %712 = vmatpush1.bf16.msra.mxu1 %v907_v41 }
  0x92   : > { %v340_v45 = vrot.slane %v334_v43, 4  ;;  %v339_v46 = vrot.slane %v332_v44, 4  ;;  %v866_v47 = vcombine.high %v380_v34, %v383_v42  ;;  %v865_v48 = vcombine.low %v380_v34, %v383_v42  ;;  %713 = vmatprep.subr.bf16.mxu1 %v930_v4 }
  0x94   : > { %v346_v49 = vsel %vm344_vm4, %v334_v43, %v340_v45  ;;  %v343_v50 = vsel %vm202_vm1, %v339_v46, %v340_v45  ;;  %670 = vmatprep.subr.bf16.mxu0 %v866_v47 }
  0x95   : > { %355 = vst [vmem:[#allocation2 + $0x80] sm:$0xf] %v346_v49  ;;  %v345_v51 = vsel %vm344_vm4, %v332_v44, %v343_v50  ;;  %v338_v52 = vpop.permute.xlu1 %337  ;;  %v336_v53 = vpop.permute.xlu0 %335  ;;  %671 = vmatpush1.bf16.msra.mxu0 %v865_v48 }
  0x96   : > { %v342_v54 = vrot.slane %v338_v52, 4  ;;  %v341_v55 = vrot.slane %v336_v53, 4 }
  0x98   : > { %v349_v56 = vsel %vm344_vm4, %v338_v52, %v342_v54  ;;  %v347_v57 = vsel %vm202_vm1, %v341_v55, %v342_v54  ;;  %v908_v58 = vld [vmem:[#allocation2 + $0x98] ss:$12 sps:$4 sm:$0xff]  }
  0x99   : > { %357 = vst [vmem:[#allocation2 + $0x8c] sm:$0xf] %v349_v56  ;;  %v348_v59 = vsel %vm344_vm4, %v336_v53, %v347_v57  ;;  %v299_v60 = vpop.permute.xlu1 %298  ;;  %v297_v61 = vpop.permute.xlu0 %296  ;;  %714 = vmatpush1.bf16.msra.mxu1 %v908_v58 }
  0x9a   : > { %v305_v62 = vrot.slane %v299_v60, 4  ;;  %v304_v63 = vrot.slane %v297_v61, 4  ;;  %v863_v2 = vcombine.high %v345_v51, %v348_v59  ;;  %v862_v3 = vcombine.low %v345_v51, %v348_v59  ;;  %715 = vmatprep.subr.bf16.mxu1 %v930_v4 }
  0x9c   : > { %v311_v5 = vsel %vm309_vm5, %v299_v60, %v305_v62  ;;  %v308_v6 = vsel %vm202_vm1, %v304_v63, %v305_v62  ;;  %672 = vmatprep.subr.bf16.mxu0 %v863_v2 }
  0x9d   : > { %320 = vst [vmem:[#allocation2 + $0x68] sm:$0xf] %v311_v5  ;;  %v310_v9 = vsel %vm309_vm5, %v297_v61, %v308_v6  ;;  %v303_v10 = vpop.permute.xlu1 %302  ;;  %v301_v11 = vpop.permute.xlu0 %300  ;;  %673 = vmatpush1.bf16.msra.mxu0 %v862_v3 }
  0x9e   : > { %v307_v12 = vrot.slane %v303_v10, 4  ;;  %v306_v13 = vrot.slane %v301_v11, 4 }
  0xa0   : > { %v314_v14 = vsel %vm309_vm5, %v303_v10, %v307_v12  ;;  %v312_v15 = vsel %vm202_vm1, %v306_v13, %v307_v12  ;;  %v909_v16 = vld [vmem:[#allocation2 + $0x80] ss:$12 sps:$4 sm:$0xff]  }
  0xa1   : > { %322 = vst [vmem:[#allocation2 + $0x74] sm:$0xf] %v314_v14  ;;  %v313_v17 = vsel %vm309_vm5, %v301_v11, %v312_v15  ;;  %v264_v18 = vpop.permute.xlu1 %263  ;;  %v262_v19 = vpop.permute.xlu0 %261  ;;  %716 = vmatpush1.bf16.msra.mxu1 %v909_v16 }
  0xa2   : > { %v270_v20 = vrot.slane %v264_v18, 4  ;;  %v269_v21 = vrot.slane %v262_v19, 4  ;;  %v860_v22 = vcombine.high %v310_v9, %v313_v17  ;;  %v859_v23 = vcombine.low %v310_v9, %v313_v17  ;;  %717 = vmatprep.subr.bf16.mxu1 %v930_v4 }
  0xa4   : > { %v276_v24 = vsel %vm274_vm6, %v264_v18, %v270_v20  ;;  %v273_v25 = vsel %vm202_vm1, %v269_v21, %v270_v20  ;;  %674 = vmatprep.subr.bf16.mxu0 %v860_v22 }
  0xa5   : > { %285 = vst [vmem:[#allocation2 + $0x50] sm:$0xf] %v276_v24  ;;  %v275_v26 = vsel %vm274_vm6, %v262_v19, %v273_v25  ;;  %v268_v27 = vpop.permute.xlu1 %267  ;;  %v266_v28 = vpop.permute.xlu0 %265  ;;  %675 = vmatpush1.bf16.msra.mxu0 %v859_v23 }
  0xa6   : > { %v272_v29 = vrot.slane %v268_v27, 4  ;;  %v271_v30 = vrot.slane %v266_v28, 4 }
  0xa8   : > { %v279_v31 = vsel %vm274_vm6, %v268_v27, %v272_v29  ;;  %v277_v32 = vsel %vm202_vm1, %v271_v30, %v272_v29  ;;  %v910_v33 = vld [vmem:[#allocation2 + $0x68] ss:$12 sps:$4 sm:$0xff]  }
  0xa9   : > { %287 = vst [vmem:[#allocation2 + $0x5c] sm:$0xf] %v279_v31  ;;  %v278_v34 = vsel %vm274_vm6, %v266_v28, %v277_v32  ;;  %v229_v35 = vpop.permute.xlu1 %228  ;;  %v227_v36 = vpop.permute.xlu0 %226  ;;  %718 = vmatpush1.bf16.msra.mxu1 %v910_v33  ;;  %v914_v27 = vld [vmem:[#allocation2 + $0x8] ss:$12 sps:$4 sm:$0xff]  }
  0xaa   : > { %v235_v37 = vrot.slane %v229_v35, 4  ;;  %v234_v38 = vrot.slane %v227_v36, 4  ;;  %v857_v39 = vcombine.high %v275_v26, %v278_v34  ;;  %v856_v40 = vcombine.low %v275_v26, %v278_v34  ;;  %719 = vmatprep.subr.bf16.mxu1 %v930_v4 }
  0xac   : > { %v241_v41 = vsel %vm239_vm7, %v229_v35, %v235_v37  ;;  %v238_v42 = vsel %vm202_vm1, %v234_v38, %v235_v37  ;;  %676 = vmatprep.subr.bf16.mxu0 %v857_v39 }
  0xad   : > { %250 = vst [vmem:[#allocation2 + $0x38] sm:$0xf] %v241_v41  ;;  %v240_v43 = vsel %vm239_vm7, %v227_v36, %v238_v42  ;;  %v233_v44 = vpop.permute.xlu1 %232  ;;  %v231_v45 = vpop.permute.xlu0 %230  ;;  %677 = vmatpush1.bf16.msra.mxu0 %v856_v40 }
  0xae   : > { %v237_v46 = vrot.slane %v233_v44, 4  ;;  %v236_v47 = vrot.slane %v231_v45, 4 }
  0xb0   : > { %v244_v48 = vsel %vm239_vm7, %v233_v44, %v237_v46  ;;  %v242_v49 = vsel %vm202_vm1, %v236_v47, %v237_v46  ;;  %v911_v50 = vld [vmem:[#allocation2 + $0x50] ss:$12 sps:$4 sm:$0xff]  }
  0xb1   : > { %252 = vst [vmem:[#allocation2 + $0x44] sm:$0xf] %v244_v48  ;;  %v243_v51 = vsel %vm239_vm7, %v231_v45, %v242_v49  ;;  %v193_v52 = vpop.permute.xlu1 %192  ;;  %v191_v53 = vpop.permute.xlu0 %190  ;;  %720 = vmatpush1.bf16.msra.mxu1 %v911_v50 }
  0xb2   : > { %v199_v54 = vrot.slane %v193_v52, 4  ;;  %v198_v55 = vrot.slane %v191_v53, 4  ;;  %v854_v56 = vcombine.high %v240_v43, %v243_v51  ;;  %v853_v57 = vcombine.low %v240_v43, %v243_v51  ;;  %721 = vmatprep.subr.bf16.mxu1 %v930_v4 }
  0xb4   : > { %v206_v58 = vsel %vm204_vm8, %v193_v52, %v199_v54  ;;  %v203_v59 = vsel %vm202_vm1, %v198_v55, %v199_v54  ;;  %678 = vmatprep.subr.bf16.mxu0 %v854_v56 }
  0xb5   : > { %215 = vst [vmem:[#allocation2 + $0x20] sm:$0xf] %v206_v58  ;;  %v205_v60 = vsel %vm204_vm8, %v191_v53, %v203_v59  ;;  %v197_v61 = vpop.permute.xlu1 %196  ;;  %v195_v62 = vpop.permute.xlu0 %194  ;;  %679 = vmatpush1.bf16.msra.mxu0 %v853_v57 }
  0xb6   : > { %v201_v63 = vrot.slane %v197_v61, 4  ;;  %v200_v2 = vrot.slane %v195_v62, 4 }
  0xb8   : > { %v209_v3 = vsel %vm204_vm8, %v197_v61, %v201_v63  ;;  %v207_v5 = vsel %vm202_vm1, %v200_v2, %v201_v63  ;;  %v912_v6 = vld [vmem:[#allocation2 + $0x38] ss:$12 sps:$4 sm:$0xff]  }
  0xb9   : > { %217 = vst [vmem:[#allocation2 + $0x2c] sm:$0xf] %v209_v3  ;;  %v208_v9 = vsel %vm204_vm8, %v195_v62, %v207_v5  ;;  %v439_v10 = vpop.permute.xlu1 %438  ;;  %v437_v11 = vpop.permute.xlu0 %436  ;;  %722 = vmatpush1.bf16.msra.mxu1 %v912_v6 }
  0xba   : > { %v445_v12 = vrot.slane %v439_v10, 4  ;;  %v444_v13 = vrot.slane %v437_v11, 4  ;;  %v851_v14 = vcombine.high %v205_v60, %v208_v9  ;;  %v850_v15 = vcombine.low %v205_v60, %v208_v9  ;;  %723 = vmatprep.subr.bf16.mxu1 %v930_v4 }
  0xbc   : > { %v451_v16 = vsel %vm449_vm9, %v439_v10, %v445_v12  ;;  %v448_v17 = vsel %vm202_vm1, %v444_v13, %v445_v12  ;;  %680 = vmatprep.subr.bf16.mxu0 %v851_v14 }
  0xbd   : > { %460 = vst [vmem:[#allocation2 + $0xc8] sm:$0xf] %v451_v16  ;;  %v450_v18 = vsel %vm449_vm9, %v437_v11, %v448_v17  ;;  %v443_v19 = vpop.permute.xlu1 %442  ;;  %v441_v20 = vpop.permute.xlu0 %440  ;;  %681 = vmatpush1.bf16.msra.mxu0 %v850_v15 }
  0xbe   : > { %v447_v21 = vrot.slane %v443_v19, 4  ;;  %v446_v22 = vrot.slane %v441_v20, 4  ;;  %682 = vmatprep.subr.bf16.mxu0 %v848_v7  ;;  %v918_v7 = vld [vmem:[%s1085_s1] ss:$8 sps:$4 sm:$0xff]  }
  0xc0   : > { %v454_v23 = vsel %vm449_vm9, %v443_v19, %v447_v21  ;;  %v452_v24 = vsel %vm202_vm1, %v446_v22, %v447_v21  ;;  %v913_v25 = vld [vmem:[#allocation2 + $0x20] ss:$12 sps:$4 sm:$0xff]  }
  0xc1   : > { %462 = vst [vmem:[#allocation2 + $0xd4] sm:$0xf] %v454_v23  ;;  %v453_v26 = vsel %vm449_vm9, %v441_v20, %v452_v24  ;;  %683 = vmatpush1.bf16.msra.mxu0 %v847_v8  ;;  %724 = vmatpush1.bf16.msra.mxu1 %v913_v25 }
  0xc2   : > { %v872_v28 = vcombine.high %v450_v18, %v453_v26  ;;  %v871_v29 = vcombine.low %v450_v18, %v453_v26  ;;  %725 = vmatprep.subr.bf16.mxu1 %v930_v4 }
  0xc4   : > { %698 = vmatprep.subr.bf16.mxu0 %v872_v28 }
  0xc5   : > { %699 = vmatpush2.bf16.msra.mxu0 %v871_v29  ;;  %726 = vmatpush1.bf16.msra.mxu1 %v914_v27 }
  0xc6   : > { %741 = vmatprep.subr.bf16.mxu1 %v930_v4 }
  0xc8   : > { %v917_v30 = vld [vmem:[#allocation2 + $0xc8] ss:$12 sps:$4 sm:$0xff]   ;;  %701 = vmatmul.mubr.bf16.vlgmr.msra.gmra.mxu0 %v918_v7 }
  0xc9   : > { %742 = vmatpush2.bf16.msra.mxu1 %v917_v30 }
  0xca   : > { %v504_v0 = vpop.permute.xlu0 %503  ;;  %v509_v31 = vpop.permute.xlu1 %508 }
  0xcc   : > { %744 = vmatmul.mubr.bf16.vlgmr.msra.gmra.mxu1 %v918_v7 }
 0x188   : > { %v702_v1 = vpop.f32.mrf.mxu0 }
 0x189   : > { %v703_v8 = vadd.f32 %v702_v1, %v504_v0 }
 0x18a   : > { %v704_v32 = vpop.f32.mrf.mxu0 }
 0x18b   : > { %v752_v33 = vmax.f32 %v703_v8, 0.0  ;;  %v705_v34 = vadd.f32 %v704_v32, %v504_v0 }
 0x18c   : > { %v706_v35 = vpop.f32.mrf.mxu0  ;;  %v745_v36 = vpop.f32.mrf.mxu1 }
 0x18d   : > { %v753_v37 = vmax.f32 %v705_v34, 0.0  ;;  %v707_v38 = vadd.f32 %v706_v35, %v509_v31  ;;  %v746_v4 = vadd.f32 %v745_v36, %v504_v0 }
 0x18e   : > { %v708_v39 = vpop.f32.mrf.mxu0  ;;  %v747_v40 = vpop.f32.mrf.mxu1 }
 0x18f   : > { %v883_v41 = vpack.c.bf16 %v753_v37, %v752_v33  ;;  %v709_v42 = vadd.f32 %v708_v39, %v509_v31  ;;  %v754_v43 = vmax.f32 %v746_v4, 0.0  ;;  %v755_v45 = vmax.f32 %v707_v38, 0.0 }
 0x190   : > { %v748_v44 = vpop.f32.mrf.mxu1 }
 0x191   : > { %778 = vst [vmem:[%s170_s10] sm:$0xff] %v883_v41  ;;  %v756_v46 = vmax.f32 %v709_v42, 0.0  ;;  %v884_v47 = vpack.c.bf16 %v754_v43, %v754_v43  ;;  %v749_v48 = vadd.f32 %v748_v44, %v509_v31 }
 0x192   : > { %v750_v49 = vpop.f32.mrf.mxu1 }
 0x193   : > { %v885_v50 = vpack.c.bf16 %v756_v46, %v755_v45  ;;  %779 = vst [vmem:[%s170_s10 + $0x8] sm:$0xf] %v884_v47  ;;  %v757_v51 = vmax.f32 %v749_v48, 0.0 }
 0x195   : > { %780 = vst [vmem:[%s170_s10 + $0xc] sm:$0xff] %v885_v50  ;;  %v886_v52 = vpack.c.bf16 %v757_v51, %v757_v51 }
 0x197   : > { %781 = vst [vmem:[%s170_s10 + $0x14] sm:$0xf] %v886_v52 }
 0x198 PF: > { %s13_s12 = sadd.s32 1, %s927_s12  }
 0x199   : > { %p10_p4 = scmp.ge.s32.totalorder %s13_s12, 6  }
 0x19b   :  { %12 = sbr.rel (!%p10_p4) target bundleno = 1 (0x1), region = 62 }

</bundles_post_ra>
